<compile_context>
chip_gen: v6e
topology: v6e:2x2x1
jax: 0.10.0
libtpu: 0.0.40
codegen_flags: <defaults>
</compile_context>

<pallas_src>
import functools

import numpy as np
import jax
import jax.numpy as jnp
from jax import lax
from jax.experimental import pallas as pl
from jax.experimental.pallas import tpu as pltpu


# ----------------------------------------------------------------------------
# Parameter / mask construction (plain JAX / numpy glue, mirrors __init__)
# ----------------------------------------------------------------------------
def create_sawtooth_masks(d, k, l_offset=0, u_offset=0):
    """Numpy re-implementation of _create_sawtooth_masks_efficient."""
    min_dim = min(d, k)
    L_base = np.tril(np.ones((min_dim, min_dim), np.float32), k=l_offset)
    U_base = np.triu(np.ones((min_dim, min_dim), np.float32), k=u_offset)
    mask1 = np.zeros((k, d), np.float32)
    mask2 = np.zeros((k, d), np.float32)
    if d >= k:
        nb = d // k
        if nb > 0:
            mask1[:, : k * nb] = np.tile(U_base, (1, nb))
            mask2[:, : k * nb] = np.tile(L_base, (1, nb))
        rem = d % k
        if rem > 0:
            mask1[:, k * nb :] = U_base[:, :rem]
            mask2[:, k * nb :] = L_base[:, :rem]
    else:
        nb = k // d
        if nb > 0:
            mask1[: d * nb, :] = np.tile(U_base, (nb, 1))
            mask2[: d * nb, :] = np.tile(L_base, (nb, 1))
        rem = k % d
        if rem > 0:
            mask1[d * nb :, :] = U_base[:rem, :]
            mask2[d * nb :, :] = L_base[:rem, :]
    return mask1, mask2


def init_params(key, degree, d, k, o, l_offset=0, u_offset=0):
    """Matches nn.Linear U(-1/sqrt(fan_in), .) init; binary masks folded into weights.

    Returns:
      w_all: (degree*k, d) -- [mask*U1; mask*U2; ...; mask*U_degree] stacked on rows
      c_w  : (o, k)        -- layer_C weight (torch orientation)
      c_b  : (o,)          -- layer_C bias
    """
    mask1, mask2 = create_sawtooth_masks(d, k, l_offset, u_offset)
    mask1 = jnp.asarray(mask1)
    mask2 = jnp.asarray(mask2)

    keys = jax.random.split(key, degree + 2)
    bound_u = 1.0 / np.sqrt(d)
    w_list = []
    for i in range(1, degree + 1):
        u = jax.random.uniform(keys[i - 1], (k, d), jnp.float32, -bound_u, bound_u)
        mask = mask1 if (i % 2 == 1) else mask2
        # module masks at init AND at forward; masks are binary so once is enough
        w_list.append(mask * u)                       # (k, d)
    w_all = jnp.concatenate(w_list, axis=0)           # (degree*k, d)

    bound_c = 1.0 / np.sqrt(k)
    c_w = jax.random.uniform(keys[degree], (o, k), jnp.float32, -bound_c, bound_c)
    c_b = jax.random.uniform(keys[degree + 1], (o,), jnp.float32, -bound_c, bound_c)
    return w_all, c_w, c_b


# ----------------------------------------------------------------------------
# Pallas kernel: whole polynomial recurrence + final linear, per row-tile
# ----------------------------------------------------------------------------
def cp_sawtooth_kernel(z_ref, w_ref, cw_ref, cb_ref, o_ref, *, degree, k):
    # z tile stays in its natural token-major (tm, d) layout.  The fused
    # projection contracts the LAST axis of both operands, so no explicit
    # XLU transpose of the big tile is needed:
    #   s[g*k + c, t] = sum_d w_all[g*k + c, d] * z[t, d]
    s = lax.dot_general(
        w_ref[...], z_ref[...],
        dimension_numbers=(((1,), (1,)), ((), ())),
        preferred_element_type=jnp.float32,
    )                                                        # (degree*k, tm) f32

    # Polynomial recurrence, tokens on lanes -> every VPU op is lane-dense.
    # k % 8 == 0 (asserted in the wrapper) keeps the row slices sublane-aligned.
    out = s[0:k, :]
    for i in range(2, degree + 1, 2):
        out = s[(i - 1) * k : i * k, :] * out + out
        if i == degree:
            break
        out = s[i * k : (i + 1) * k, :] * out + out

    # layer_C: (o, k) @ (k, tm) + (o, 1), then one small (o, tm) -> (tm, o)
    # XLU transpose so the store is token-major (no wrapper-side HBM round
    # trip of the output).  The 16-lane store is hidden under the z DMA.
    x = jnp.dot(cw_ref[...], out, preferred_element_type=jnp.float32) + cb_ref[...]
    o_ref[...] = x.T.astype(o_ref.dtype)                     # (tm, o) token-major
    # TODO(synk): if a bundle dump ever shows vld/vst (spill) saturation at very
    # large tm, process the recurrence in lane chunks; DMA-bound today, so skipped.


def _round_up(x, m):
    return ((x + m - 1) // m) * m


def _default_min_grid():
    """Best-effort: keep >=4 grid steps on 2-TensorCore chips (v7x), else 2."""
    try:
        kind = jax.devices()[0].device_kind.lower()
        if "v7" in kind:
            return 4
    except Exception:
        pass
    return 2


def _choose_tm(n, tm_max=4096, min_grid=2):
    """Large row tiles (amortize ~0.35us/grid-step), multiple of 128, capped so
    the grid keeps >= min_grid steps when n is large enough."""
    tm = _round_up(max(1, pl.cdiv(n, min_grid)), 128)
    return int(max(128, min(tm, tm_max)))


def cp_sawtooth_forward(z, w_all, c_w, c_b, *, degree, tm=None, tm_max=4096,
                        min_grid=None, out_dtype=None,
                        vmem_limit_bytes=32 * 1024 * 1024):
    """z: (..., d) -> (..., o).  Entire hot path runs in one Pallas kernel."""
    orig_shape = z.shape[:-1]
    d = z.shape[-1]
    z2 = z.reshape(-1, d)
    n = z2.shape[0]
    k = w_all.shape[0] // degree
    o = c_w.shape[0]
    if k % 8 != 0:
        raise ValueError(f"rank k={k} must be a multiple of 8 for sublane-aligned "
                         f"recurrence slices (got k={k}).")
    if out_dtype is None:
        out_dtype = z.dtype

    # Keep the big MXU matmul dtype-homogeneous: if z arrives bf16, cast the tiny
    # fused weight once to bf16 (bf16 x bf16 MXU with f32 accumulation).  The
    # recurrence and layer_C stay f32 regardless.
    if w_all.dtype != z2.dtype:
        w_all = w_all.astype(z2.dtype)
    c_w = c_w.astype(jnp.float32)                       # (o, k), tiny
    c_b = jnp.asarray(c_b, jnp.float32).reshape(o, 1)   # column -> lane broadcast

    if min_grid is None:
        min_grid = _default_min_grid()
    if tm is None:
        tm = _choose_tm(n, tm_max=tm_max, min_grid=min_grid)

    # Ragged n handled by the partial final block (no jnp.pad copy of z).
    grid = (pl.cdiv(n, tm),)

    z_item = np.dtype(z2.dtype).itemsize
    o_item = np.dtype(out_dtype).itemsize
    cost = pl.CostEstimate(
        flops=2 * n * (degree * k * d + o * k),
        transcendentals=0,
        bytes_accessed=n * d * z_item + n * o * o_item
        + int(w_all.size) * z_item + (int(c_w.size) + int(c_b.size)) * 4,
    )

    kernel = functools.partial(cp_sawtooth_kernel, degree=degree, k=k)
    out = pl.pallas_call(
        kernel,
        out_shape=jax.ShapeDtypeStruct((n, o), out_dtype),
        grid_spec=pltpu.PrefetchScalarGridSpec(
            num_scalar_prefetch=0,
            grid=grid,
            in_specs=[
                pl.BlockSpec((tm, d), lambda i: (i, 0)),           # z row-tile
                pl.BlockSpec((degree * k, d), lambda i: (0, 0)),   # fused W (resident)
                pl.BlockSpec((o, k), lambda i: (0, 0)),            # layer_C weight
                pl.BlockSpec((o, 1), lambda i: (0, 0)),            # layer_C bias col
            ],
            out_specs=pl.BlockSpec((tm, o), lambda i: (i, 0)),     # token-major output
        ),
        compiler_params=pltpu.CompilerParams(
            dimension_semantics=("parallel",),
            vmem_limit_bytes=int(vmem_limit_bytes),
        ),
        cost_estimate=cost,
    )(z2, w_all, c_w, c_b)

    return out.reshape(*orig_shape, o)


# ----------------------------------------------------------------------------
# Pure-JAX reference (torch-orientation) for a correctness sanity check
# ----------------------------------------------------------------------------
def cp_sawtooth_ref(z, w_all, c_w, c_b, *, degree):
    k = w_all.shape[0] // degree
    z2 = z.reshape(-1, z.shape[-1]).astype(jnp.float32)
    w_all = w_all.astype(jnp.float32)
    ws = [w_all[i * k : (i + 1) * k] for i in range(degree)]   # each (k, d)
    out = z2 @ ws[0].T
    for i in range(2, degree + 1, 2):
        out = (z2 @ ws[i - 1].T) * out + out
        if i == degree:
            break
        out = (z2 @ ws[i].T) * out + out
    x = out @ c_w.T + c_b.reshape(1, -1)
    return x.reshape(*z.shape[:-1], c_w.shape[0])


if __name__ == "__main__":
    # Small shapes implied by the module: z is (..., d). Pick batch=2, seq=64.
    degree, d, k, o = 4, 32, 16, 16
    key = jax.random.PRNGKey(0)
    kz, kp = jax.random.split(key)

    z = jax.random.normal(kz, (2, 64, d), jnp.float32)  # (..., d)
    w_all, c_w, c_b = init_params(kp, degree, d, k, o)

    # 1) f32 path, N a multiple of the tile: exact-semantics check vs reference.
    y = jax.block_until_ready(cp_sawtooth_forward(z, w_all, c_w, c_b, degree=degree))
    y_ref = cp_sawtooth_ref(z, w_all, c_w, c_b, degree=degree)
    np.testing.assert_allclose(np.asarray(y), np.asarray(y_ref), rtol=1e-5, atol=1e-5)
    assert y.shape == (2, 64, o)

    # 2) Ragged N (n % tm != 0): exercises the partial final block (no jnp.pad),
    #    verifying OOB output rows are masked on writeback.
    z_rag = jax.random.normal(kz, (3, 43, d), jnp.float32)     # 129 tokens
    y_rag = jax.block_until_ready(
        cp_sawtooth_forward(z_rag, w_all, c_w, c_b, degree=degree, tm=128))
    y_rag_ref = cp_sawtooth_ref(z_rag, w_all, c_w, c_b, degree=degree)
    np.testing.assert_allclose(np.asarray(y_rag), np.asarray(y_rag_ref),
                               rtol=1e-5, atol=1e-5)
    assert y_rag.shape == (3, 43, o)

    # 3) End-to-end bf16 path (z arrives bf16 in HBM; w_all matched to bf16 by the
    #    wrapper; MXU bf16 x bf16 with f32 accumulation; bf16 output).
    z_bf = z.astype(jnp.bfloat16)
    y_bf = jax.block_until_ready(cp_sawtooth_forward(z_bf, w_all, c_w, c_b, degree=degree))
    z_rt = z_bf.astype(jnp.float32)
    w_rt = w_all.astype(jnp.bfloat16).astype(jnp.float32)
    y_bf_ref = cp_sawtooth_ref(z_rt, w_rt, c_w, c_b, degree=degree)
    np.testing.assert_allclose(np.asarray(y_bf).astype(np.float32),
                               np.asarray(y_bf_ref), rtol=2e-2, atol=2e-2)

    print("KERNEL_OK")
</pallas_src>

<mosaic_0001>
module attributes {stable_mosaic.version = 11 : i64} {
  func.func @cp_sawtooth_kernel(%arg0: i32, %arg1: memref<128x32xf32, #tpu.memory_space<vmem>>, %arg2: memref<64x32xf32, #tpu.memory_space<vmem>>, %arg3: memref<16x16xf32, #tpu.memory_space<vmem>>, %arg4: memref<16x1xf32, #tpu.memory_space<vmem>>, %arg5: memref<128x16xf32, #tpu.memory_space<vmem>>) attributes {dimension_semantics = [#tpu.dimension_semantics<parallel>], iteration_bounds = array<i64: 1>, scalar_prefetch = 0 : i64, scratch_operands = 0 : i64, tpu.core_type = #tpu.core_type<tc>, window_params = [{transform_indices = @transform_0, window_bounds = array<i64: 128, 32>}, {pipeline_mode = #tpu.pipeline_mode<synchronous>, transform_indices = @transform_1, window_bounds = array<i64: 64, 32>}, {pipeline_mode = #tpu.pipeline_mode<synchronous>, transform_indices = @transform_2, window_bounds = array<i64: 16, 16>}, {pipeline_mode = #tpu.pipeline_mode<synchronous>, transform_indices = @transform_3, window_bounds = array<i64: 16, 1>}, {transform_indices = @transform_4, window_bounds = array<i64: 128, 16>}]} {
    %c0 = arith.constant 0 : index
    %c0_0 = arith.constant 0 : index
    %0 = vector.load %arg2[%c0, %c0_0] : memref<64x32xf32, #tpu.memory_space<vmem>>, vector<64x32xf32>
    %c0_1 = arith.constant 0 : index
    %c0_2 = arith.constant 0 : index
    %1 = vector.load %arg1[%c0_1, %c0_2] : memref<128x32xf32, #tpu.memory_space<vmem>>, vector<128x32xf32>
    %cst = arith.constant dense<0.000000e+00> : vector<64x128xf32>
    %2 = tpu.matmul %0, %1, %cst {dimension_numbers = #tpu.dot_dimension_numbers<[1], [1], [0], [0], [0, 0, 1, 0], [], []>} : vector<64x32xf32>, vector<128x32xf32>, vector<64x128xf32> -> vector<64x128xf32>
    %3 = vector.extract_strided_slice %2 {offsets = [0, 0], sizes = [16, 128], strides = [1, 1]} : vector<64x128xf32> to vector<16x128xf32>
    %4 = vector.extract_strided_slice %2 {offsets = [16, 0], sizes = [16, 128], strides = [1, 1]} : vector<64x128xf32> to vector<16x128xf32>
    %5 = arith.mulf %4, %3 : vector<16x128xf32>
    %6 = arith.addf %5, %3 : vector<16x128xf32>
    %7 = vector.extract_strided_slice %2 {offsets = [32, 0], sizes = [16, 128], strides = [1, 1]} : vector<64x128xf32> to vector<16x128xf32>
    %8 = arith.mulf %7, %6 : vector<16x128xf32>
    %9 = arith.addf %8, %6 : vector<16x128xf32>
    %10 = vector.extract_strided_slice %2 {offsets = [48, 0], sizes = [16, 128], strides = [1, 1]} : vector<64x128xf32> to vector<16x128xf32>
    %11 = arith.mulf %10, %9 : vector<16x128xf32>
    %12 = arith.addf %11, %9 : vector<16x128xf32>
    %c0_3 = arith.constant 0 : index
    %c0_4 = arith.constant 0 : index
    %13 = vector.load %arg3[%c0_3, %c0_4] : memref<16x16xf32, #tpu.memory_space<vmem>>, vector<16x16xf32>
    %cst_5 = arith.constant dense<0.000000e+00> : vector<16x128xf32>
    %14 = tpu.matmul %13, %12, %cst_5 {dimension_numbers = #tpu.dot_dimension_numbers<[1], [0], [0], [1], [0, 0, 1, 1], [], []>} : vector<16x16xf32>, vector<16x128xf32>, vector<16x128xf32> -> vector<16x128xf32>
    %c0_6 = arith.constant 0 : index
    %c0_7 = arith.constant 0 : index
    %15 = vector.load %arg4[%c0_6, %c0_7] : memref<16x1xf32, #tpu.memory_space<vmem>>, vector<16x1xf32>
    %16 = vector.broadcast %15 : vector<16x1xf32> to vector<16x128xf32>
    %17 = arith.addf %14, %16 : vector<16x128xf32>
    %18 = tpu.transpose %17, [1, 0] : vector<16x128xf32> -> vector<128x16xf32>
    %c0_8 = arith.constant 0 : index
    %c0_9 = arith.constant 0 : index
    %19 = vector.load %arg5[%c0_8, %c0_9] : memref<128x16xf32, #tpu.memory_space<vmem>>, vector<128x16xf32>
    tpu.vector_store %arg5[%c0_8, %c0_9], %18 {strides = array<i32>} : memref<128x16xf32, #tpu.memory_space<vmem>>, vector<128x16xf32>,
    return
  }
  func.func @transform_0(%arg0: i32) -> (i32, i32) {
    %c0_i32 = arith.constant 0 : i32
    %c0_i32_0 = arith.constant 0 : i32
    return %arg0, %c0_i32 : i32, i32
  }
  func.func @transform_1(%arg0: i32) -> (i32, i32) {
    %c0_i32 = arith.constant 0 : i32
    %c0_i32_0 = arith.constant 0 : i32
    %c0_i32_1 = arith.constant 0 : i32
    return %c0_i32, %c0_i32_0 : i32, i32
  }
  func.func @transform_2(%arg0: i32) -> (i32, i32) {
    %c0_i32 = arith.constant 0 : i32
    %c0_i32_0 = arith.constant 0 : i32
    %c0_i32_1 = arith.constant 0 : i32
    return %c0_i32, %c0_i32_0 : i32, i32
  }
  func.func @transform_3(%arg0: i32) -> (i32, i32) {
    %c0_i32 = arith.constant 0 : i32
    %c0_i32_0 = arith.constant 0 : i32
    %c0_i32_1 = arith.constant 0 : i32
    return %c0_i32, %c0_i32_0 : i32, i32
  }
  func.func @transform_4(%arg0: i32) -> (i32, i32) {
    %c0_i32 = arith.constant 0 : i32
    %c0_i32_0 = arith.constant 0 : i32
    return %arg0, %c0_i32 : i32, i32
  }
}

</mosaic_0001>

<bundles_post_ra>
// kernel: tpu_custom_call.1
= control target key start
LH: loop header
LB: loop body
LE: loop exit
PB: predicated region body
PF: predicated region fallthrough
CT: control target
= control target key end

     0   :  { %vm41_vm0 = vcmask 261120   ;;  %vm245_vm1 = vcmask 130048   ;;  %v519_v25 = vmov 0   ;;  %s767_s0 = inlined_call_operand.vmem [shape: f32[128,32], index: 0, kind: input, shape index: {}]   ;;  %s768_s1 = inlined_call_operand.vmem [shape: f32[64,32], index: 1, kind: input, shape index: {}]   ;;  %s769_s2 = inlined_call_operand.vmem [shape: f32[16,16], index: 2, kind: input, shape index: {}]   ;;  %s770_s3 = inlined_call_operand.vmem [shape: f32[16,1], index: 3, kind: input, shape index: {}]   ;;  %s771_s4 = inlined_call_operand.vmem [shape: f32[128,16], index: 4, kind: output, shape index: {}]  }
   0x1   :  { %v40_v0 = vld [vmem:[%s767_s0 + $0x78] sm:$0xff]  ;;  %v39_v1 = vld [vmem:[%s767_s0 + $0x70] sm:$0xff]  ;;  %v38_v2 = vld [vmem:[%s767_s0 + $0x68] sm:$0xff]  ;;  %518 = vset.pattern.permute.xlu0 %v519_v25 }
   0x2   :  { %433 = vmatprep.subr.msk.mxu0 %vm41_vm0, %v40_v0  ;;  %484 = vmatprep.subr.msk.mxu1 %vm41_vm0, %v40_v0  ;;  %v17_v3 = vld [vmem:[%s768_s1] sm:$0xff]  ;;  %v23_v4 = vld [vmem:[%s768_s1 + $0x30] sm:$0xff]  ;;  %v36_v6 = vld [vmem:[%s767_s0 + $0x58] sm:$0xff] }
   0x3   :  { %434 = vmatpush3.xpose.msk.msra.mxu0 %vm41_vm0, %v40_v0  ;;  %500 = vmatpush3.xpose.msk.msra.mxu1 %vm41_vm0, %v40_v0  ;;  %v37_v5 = vld [vmem:[%s767_s0 + $0x60] sm:$0xff]  ;;  %v35_v7 = vld [vmem:[%s767_s0 + $0x50] sm:$0xff]  ;;  %v34_v8 = vld [vmem:[%s767_s0 + $0x48] sm:$0xff] }
   0x4   :  { %435 = vmatprep.subr.msk.mxu0 %vm41_vm0, %v39_v1  ;;  %485 = vmatprep.subr.msk.mxu1 %vm41_vm0, %v39_v1  ;;  %v33_v9 = vld [vmem:[%s767_s0 + $0x40] sm:$0xff]  ;;  %v32_v10 = vld [vmem:[%s767_s0 + $0x38] sm:$0xff]  ;;  %v31_v11 = vld [vmem:[%s767_s0 + $0x30] sm:$0xff] }
   0x5   :  { %465 = vmatprep.mubr.msk.f32.mxu0 %vm41_vm0, %v17_v3  ;;  %474 = vmatprep.mubr.msk.f32.mxu1 %vm41_vm0, %v23_v4  ;;  %v30_v12 = vld [vmem:[%s767_s0 + $0x28] sm:$0xff]  ;;  %v29_v13 = vld [vmem:[%s767_s0 + $0x20] sm:$0xff]  ;;  %v28_v14 = vld [vmem:[%s767_s0 + $0x18] sm:$0xff] }
   0x6   :  { %v27_v15 = vld [vmem:[%s767_s0 + $0x10] sm:$0xff]  ;;  %v26_v16 = vld [vmem:[%s767_s0 + $0x8] sm:$0xff]  ;;  %v25_v17 = vld [vmem:[%s767_s0] sm:$0xff] }
   0x7   :  { %436 = vmatpush3.xpose.msk.msra.mxu0 %vm41_vm0, %v39_v1  ;;  %501 = vmatpush3.xpose.msk.msra.mxu1 %vm41_vm0, %v39_v1  ;;  %v18_v18 = vld [vmem:[%s768_s1 + $0x8] sm:$0xff]  ;;  %v24_v19 = vld [vmem:[%s768_s1 + $0x38] sm:$0xff]  ;;  %v19_v20 = vld [vmem:[%s768_s1 + $0x10] sm:$0xff] }
   0x8   :  { %437 = vmatprep.subr.msk.mxu0 %vm41_vm0, %v38_v2  ;;  %486 = vmatprep.subr.msk.mxu1 %vm41_vm0, %v38_v2  ;;  %v20_v21 = vld [vmem:[%s768_s1 + $0x18] sm:$0xff]  ;;  %v21_v22 = vld [vmem:[%s768_s1 + $0x20] sm:$0xff]  ;;  %v22_v23 = vld [vmem:[%s768_s1 + $0x28] sm:$0xff] }
   0x9   :  { %v231_v24 = vld [vmem:[%s769_s2] sm:$0xff]  ;;  %v234_v27 = vld [vmem:[%s770_s3 + $0x8] sm:$0xff] }
   0xa   :  { %v233_v26 = vld [vmem:[%s770_s3] sm:$0xff]  ;;  %v232_v48 = vld [vmem:[%s769_s2 + $0x8] sm:$0xff] }
   0xb   :  { %438 = vmatpush3.xpose.msk.msra.mxu0 %vm41_vm0, %v38_v2  ;;  %502 = vmatpush3.xpose.msk.msra.mxu1 %vm41_vm0, %v38_v2 }
   0xc   :  { %439 = vmatprep.subr.msk.mxu0 %vm41_vm0, %v37_v5  ;;  %487 = vmatprep.subr.msk.mxu1 %vm41_vm0, %v37_v5 }
   0xd   :  { %237 = vperm.xlu0 %518, %v233_v26  }
   0xf   :  { %440 = vmatpush3.xpose.msk.msra.mxu0 %vm41_vm0, %v37_v5  ;;  %503 = vmatpush3.xpose.msk.msra.mxu1 %vm41_vm0, %v37_v5 }
  0x10   :  { %441 = vmatprep.subr.msk.mxu0 %vm41_vm0, %v36_v6  ;;  %488 = vmatprep.subr.msk.mxu1 %vm41_vm0, %v36_v6 }
  0x11   :  { %242 = vperm.xlu0 %518, %v234_v27  }
  0x13   :  { %442 = vmatpush3.xpose.msk.msra.mxu0 %vm41_vm0, %v36_v6  ;;  %504 = vmatpush3.xpose.msk.msra.mxu1 %vm41_vm0, %v36_v6 }
  0x14   :  { %443 = vmatprep.subr.msk.mxu0 %vm41_vm0, %v35_v7  ;;  %489 = vmatprep.subr.msk.mxu1 %vm41_vm0, %v35_v7 }
  0x17   :  { %444 = vmatpush3.xpose.msk.msra.mxu0 %vm41_vm0, %v35_v7  ;;  %505 = vmatpush3.xpose.msk.msra.mxu1 %vm41_vm0, %v35_v7 }
  0x18   :  { %445 = vmatprep.subr.msk.mxu0 %vm41_vm0, %v34_v8  ;;  %490 = vmatprep.subr.msk.mxu1 %vm41_vm0, %v34_v8 }
  0x1b   :  { %446 = vmatpush3.xpose.msk.msra.mxu0 %vm41_vm0, %v34_v8  ;;  %506 = vmatpush3.xpose.msk.msra.mxu1 %vm41_vm0, %v34_v8 }
  0x1c   :  { %447 = vmatprep.subr.msk.mxu0 %vm41_vm0, %v33_v9  ;;  %491 = vmatprep.subr.msk.mxu1 %vm41_vm0, %v33_v9 }
  0x1f   :  { %448 = vmatpush3.xpose.msk.msra.mxu0 %vm41_vm0, %v33_v9  ;;  %507 = vmatpush3.xpose.msk.msra.mxu1 %vm41_vm0, %v33_v9 }
  0x20   :  { %449 = vmatprep.subr.msk.mxu0 %vm41_vm0, %v32_v10  ;;  %492 = vmatprep.subr.msk.mxu1 %vm41_vm0, %v32_v10 }
  0x23   :  { %450 = vmatpush3.xpose.msk.msra.mxu0 %vm41_vm0, %v32_v10  ;;  %508 = vmatpush3.xpose.msk.msra.mxu1 %vm41_vm0, %v32_v10 }
  0x24   :  { %451 = vmatprep.subr.msk.mxu0 %vm41_vm0, %v31_v11  ;;  %493 = vmatprep.subr.msk.mxu1 %vm41_vm0, %v31_v11 }
  0x27   :  { %452 = vmatpush3.xpose.msk.msra.mxu0 %vm41_vm0, %v31_v11  ;;  %509 = vmatpush3.xpose.msk.msra.mxu1 %vm41_vm0, %v31_v11 }
  0x28   :  { %453 = vmatprep.subr.msk.mxu0 %vm41_vm0, %v30_v12  ;;  %494 = vmatprep.subr.msk.mxu1 %vm41_vm0, %v30_v12 }
  0x2b   :  { %454 = vmatpush3.xpose.msk.msra.mxu0 %vm41_vm0, %v30_v12  ;;  %510 = vmatpush3.xpose.msk.msra.mxu1 %vm41_vm0, %v30_v12 }
  0x2c   :  { %455 = vmatprep.subr.msk.mxu0 %vm41_vm0, %v29_v13  ;;  %495 = vmatprep.subr.msk.mxu1 %vm41_vm0, %v29_v13 }
  0x2f   :  { %456 = vmatpush3.xpose.msk.msra.mxu0 %vm41_vm0, %v29_v13  ;;  %511 = vmatpush3.xpose.msk.msra.mxu1 %vm41_vm0, %v29_v13 }
  0x30   :  { %457 = vmatprep.subr.msk.mxu0 %vm41_vm0, %v28_v14  ;;  %496 = vmatprep.subr.msk.mxu1 %vm41_vm0, %v28_v14 }
  0x33   :  { %458 = vmatpush3.xpose.msk.msra.mxu0 %vm41_vm0, %v28_v14  ;;  %512 = vmatpush3.xpose.msk.msra.mxu1 %vm41_vm0, %v28_v14 }
  0x34   :  { %459 = vmatprep.subr.msk.mxu0 %vm41_vm0, %v27_v15  ;;  %497 = vmatprep.subr.msk.mxu1 %vm41_vm0, %v27_v15 }
  0x37   :  { %460 = vmatpush3.xpose.msk.msra.mxu0 %vm41_vm0, %v27_v15  ;;  %513 = vmatpush3.xpose.msk.msra.mxu1 %vm41_vm0, %v27_v15 }
  0x38   :  { %461 = vmatprep.subr.msk.mxu0 %vm41_vm0, %v26_v16  ;;  %498 = vmatprep.subr.msk.mxu1 %vm41_vm0, %v26_v16 }
  0x3b   :  { %462 = vmatpush3.xpose.msk.msra.mxu0 %vm41_vm0, %v26_v16  ;;  %514 = vmatpush3.xpose.msk.msra.mxu1 %vm41_vm0, %v26_v16 }
  0x3c   :  { %463 = vmatprep.subr.msk.mxu0 %vm41_vm0, %v25_v17  ;;  %499 = vmatprep.subr.msk.mxu1 %vm41_vm0, %v25_v17 }
  0x3f   :  { %464 = vmatpush3.xpose.msk.msra.mxu0 %vm41_vm0, %v25_v17  ;;  %515 = vmatpush3.xpose.msk.msra.mxu1 %vm41_vm0, %v25_v17 }
  0x42   :  { %466 = vmatmul.mubr.msk.f32.vlgmr.msra.gmra.mxu0 %vm41_vm0, %v18_v18  ;;  %475 = vmatmul.mubr.msk.f32.vlgmr.msra.gmra.mxu1 %vm41_vm0, %v24_v19 }
  0x43   :  { %468 = vmatprep.mubr.msk.f32.mxu0 %vm41_vm0, %v19_v20  ;;  %481 = vmatprep.mubr.msk.f32.mxu1 %vm245_vm1, %v231_v24 }
  0x46   :  { %469 = vmatmul.mubr.msk.f32.gmra.mxu0 %vm41_vm0, %v20_v21 }
  0x47   :  { %471 = vmatprep.mubr.msk.f32.mxu0 %vm41_vm0, %v21_v22 }
  0x4a   :  { %472 = vmatmul.mubr.msk.f32.gmra.mxu0 %vm41_vm0, %v22_v23 }
  0x88   :  { %v238_v49 = vpop.permute.xlu0 %237 }
  0x8c   :  { %v243_v53 = vpop.permute.xlu0 %242 }
 0x102   :  { %v467_v28 = vpop.f32.mrf.mxu0  ;;  %v476_v39 = vpop.f32.mrf.mxu1 }
 0x104   :  { %v180_v29 = vpop.f32.mrf.mxu0  ;;  %v210_v44 = vpop.f32.mrf.mxu1 }
 0x106   :  { %v470_v30 = vpop.f32.mrf.mxu0 }
 0x107   :  { %v220_v31 = vmul.f32 %v470_v30, %v467_v28 }
 0x108   :  { %v190_v32 = vpop.f32.mrf.mxu0 }
 0x109   :  { %v219_v33 = vmul.f32 %v190_v32, %v180_v29  ;;  %v222_v34 = vadd.f32 %v467_v28, %v220_v31 }
 0x10a   :  { %v473_v35 = vpop.f32.mrf.mxu0 }
 0x10b   :  { %v224_v36 = vmul.f32 %v473_v35, %v222_v34  ;;  %v221_v37 = vadd.f32 %v219_v33, %v180_v29 }
 0x10c   :  { %v200_v38 = vpop.f32.mrf.mxu0 }
 0x10d   :  { %v223_v40 = vmul.f32 %v221_v37, %v200_v38  ;;  %v226_v41 = vadd.f32 %v224_v36, %v222_v34 }
 0x10f   :  { %v228_v42 = vmul.f32 %v476_v39, %v226_v41  ;;  %v225_v43 = vadd.f32 %v223_v40, %v221_v37 }
 0x111   :  { %v230_v45 = vadd.f32 %v228_v42, %v226_v41  ;;  %v227_v46 = vmul.f32 %v225_v43, %v210_v44 }
 0x113   :  { %v229_v47 = vadd.f32 %v227_v46, %v225_v43  ;;  %477 = vmatprep.subr.mxu1 %v230_v45 }
 0x114   :  { %478 = vmatpush3.msra.mxu1 %v230_v45 }
 0x115   :  { %479 = vmatprep.subr.mxu1 %v229_v47 }
 0x116   :  { %480 = vmatpush3.msra.mxu1 %v229_v47 }
 0x117   :  { %482 = vmatmul.mubr.msk.f32.vlgmr.msra.gmra.mxu1 %vm245_vm1, %v232_v48 }
 0x1d7   :  { %v483_v50 = vpop.f32.mrf.mxu1 }
 0x1d8   :  { %v324_v54 = vadd.f32 %v483_v50, %v243_v53 }
 0x1d9   :  { %v318_v51 = vpop.f32.mrf.mxu1 }
 0x1da   :  { %v319_v52 = vadd.f32 %v318_v51, %v238_v49 }
 0x1dc   :  { %327 = vxpose.xlu1.b32.start [1/2] (short) %v319_v52, 128 }
 0x1e0   :  { %328 = vxpose.xlu1.b32.end [2/2] (short) %v324_v54, 128 }
 0x258   :  { %v343_v55 = vpop.trf.xlu1 }
 0x259   :  { %359 = vst.msk [vmem:[%s771_s4] sm:$0xff] %vm245_vm1, %v343_v55 }
 0x25c   :  { %v344_v56 = vpop.trf.xlu1 }
 0x25d   :  { %360 = vst.msk [vmem:[%s771_s4 + $0x8] sm:$0xff] %vm245_vm1, %v344_v56 }
 0x260   :  { %v345_v57 = vpop.trf.xlu1 }
 0x261   :  { %361 = vst.msk [vmem:[%s771_s4 + $0x10] sm:$0xff] %vm245_vm1, %v345_v57 }
 0x264   :  { %v346_v58 = vpop.trf.xlu1 }
 0x265   :  { %362 = vst.msk [vmem:[%s771_s4 + $0x18] sm:$0xff] %vm245_vm1, %v346_v58 }
 0x268   :  { %v347_v59 = vpop.trf.xlu1 }
 0x269   :  { %363 = vst.msk [vmem:[%s771_s4 + $0x20] sm:$0xff] %vm245_vm1, %v347_v59 }
 0x26c   :  { %v348_v60 = vpop.trf.xlu1 }
 0x26d   :  { %364 = vst.msk [vmem:[%s771_s4 + $0x28] sm:$0xff] %vm245_vm1, %v348_v60 }
 0x270   :  { %v349_v61 = vpop.trf.xlu1 }
 0x271   :  { %365 = vst.msk [vmem:[%s771_s4 + $0x30] sm:$0xff] %vm245_vm1, %v349_v61 }
 0x274   :  { %v350_v62 = vpop.trf.xlu1 }
 0x275   :  { %366 = vst.msk [vmem:[%s771_s4 + $0x38] sm:$0xff] %vm245_vm1, %v350_v62 }
 0x278   :  { %v351_v63 = vpop.trf.xlu1 }
 0x279   :  { %367 = vst.msk [vmem:[%s771_s4 + $0x40] sm:$0xff] %vm245_vm1, %v351_v63 }
 0x27c   :  { %v352_v0 = vpop.trf.xlu1 }
 0x27d   :  { %368 = vst.msk [vmem:[%s771_s4 + $0x48] sm:$0xff] %vm245_vm1, %v352_v0 }
 0x280   :  { %v353_v1 = vpop.trf.xlu1 }
 0x281   :  { %369 = vst.msk [vmem:[%s771_s4 + $0x50] sm:$0xff] %vm245_vm1, %v353_v1 }
 0x284   :  { %v354_v2 = vpop.trf.xlu1 }
 0x285   :  { %370 = vst.msk [vmem:[%s771_s4 + $0x58] sm:$0xff] %vm245_vm1, %v354_v2 }
 0x288   :  { %v355_v3 = vpop.trf.xlu1 }
 0x289   :  { %371 = vst.msk [vmem:[%s771_s4 + $0x60] sm:$0xff] %vm245_vm1, %v355_v3 }
 0x28c   :  { %v356_v4 = vpop.trf.xlu1 }
 0x28d   :  { %372 = vst.msk [vmem:[%s771_s4 + $0x68] sm:$0xff] %vm245_vm1, %v356_v4 }
 0x290   :  { %v357_v5 = vpop.trf.xlu1 }
 0x291   :  { %373 = vst.msk [vmem:[%s771_s4 + $0x70] sm:$0xff] %vm245_vm1, %v357_v5 }
 0x294   :  { %v358_v6 = vpop.trf.xlu1 }
 0x295   :  { %374 = vst.msk [vmem:[%s771_s4 + $0x78] sm:$0xff] %vm245_vm1, %v358_v6 }

</bundles_post_ra>
